<compile_context>
chip_gen: v6e
topology: v6e:2x2x1
jax: 0.10.0
libtpu: 0.0.40
codegen_flags: <defaults>
</compile_context>

<pallas_src>
import jax
import jax.numpy as jnp
from jax.experimental import pallas as pl
from jax.experimental.pallas import tpu as pltpu

_LANE_W = 512                          # lane-dense last dim (multiple of 128)
_MAX_TILE_BYTES = 4 * 1024 * 1024      # ~4 MiB per tile (2048 f32 rows x 512)
_VMEM_LIMIT_BYTES = 32 * 1024 * 1024   # explicit scoped-VMEM budget (all gens)


def _copy_kernel(x_ref, o_ref):
    # Empty nn.Sequential == identity: the whole "encoder" is a copy.
    o_ref[...] = x_ref[...]


def _pallas_copy(x, *, grid, block_shape, index_map):
    """One tiled, double-buffered HBM->HBM identity copy."""
    itemsize = jnp.dtype(x.dtype).itemsize
    return pl.pallas_call(
        _copy_kernel,
        out_shape=jax.ShapeDtypeStruct(x.shape, x.dtype),
        grid=grid,
        in_specs=[pl.BlockSpec(block_shape, index_map)],
        out_specs=pl.BlockSpec(block_shape, index_map),
        compiler_params=pltpu.CompilerParams(
            dimension_semantics=("parallel",),
            vmem_limit_bytes=_VMEM_LIMIT_BYTES,
        ),
        cost_estimate=pl.CostEstimate(
            flops=0,
            transcendentals=0,
            bytes_accessed=2 * int(x.size) * itemsize,
        ),
    )(x)


def object_encoder_forward(image, rescale=False, size=32, materialize=False):
    """Pallas implementation of object_encoder.forward.

    image: jnp array (e.g. NCHW), any dtype.
    rescale: must be False (PIL thumbnail path not representable on tensors).
    materialize: if False (default), return `image` directly -- the module is
        the identity, so skipping the kernel is the fastest correct answer.
        If True, produce a fresh HBM copy through the Pallas kernel.
    """
    if rescale:
        # TODO(synk): PIL Image.thumbnail rescale has no Pallas equivalent.
        raise NotImplementedError("rescale=True uses PIL Image.thumbnail")

    image = jnp.asarray(image)
    if not materialize or image.size == 0 or image.ndim == 0:
        # Top-value path from the perf review: identity needs no kernel.
        return image

    total = int(image.size)
    itemsize = jnp.dtype(image.dtype).itemsize

    if total % _LANE_W == 0:
        # Lane-dense path: free (bitcast-level) reshape to (rows, 512) so
        # every store is a full unmasked 128-lane vst and DMA bursts are long.
        rows = total // _LANE_W
        x2d = image.reshape(rows, _LANE_W)
        tile_r_max = max(8, (_MAX_TILE_BYTES // (_LANE_W * itemsize)) // 8 * 8)
        if rows <= tile_r_max:
            tile_r = rows        # single exact block (block == full row dim)
        else:
            tile_r = tile_r_max  # boundary block (if any) is masked by Pallas
        out2d = _pallas_copy(
            x2d,
            grid=(pl.cdiv(rows, tile_r),),
            block_shape=(tile_r, _LANE_W),
            index_map=lambda i: (i, 0),
        )
        return out2d.reshape(image.shape)

    # Unaligned fallback: copy in the original shape -- tiled along the
    # leading dim with full trailing dims (block == full dims is always
    # legal).  No pad / slice HBM round-trips.
    if image.ndim == 1:
        return _pallas_copy(image, grid=(1,), block_shape=(total,),
                            index_map=lambda i: (0,))

    ndim = image.ndim
    # TODO(synk): if prod(shape[1:]) were enormous this per-row block could
    #             exceed VMEM; not expected for image batches.
    block_shape = (1,) + tuple(image.shape[1:])
    index_map = lambda i: (i,) + (0,) * (ndim - 1)
    return _pallas_copy(image, grid=(image.shape[0],),
                        block_shape=block_shape, index_map=index_map)


if __name__ == "__main__":
    key = jax.random.PRNGKey(0)
    k1, k2, k3 = jax.random.split(key, 3)

    # 1) Default fast path: identity bypass (no kernel launched).
    x = jax.random.normal(k1, (2, 4, 16, 16), dtype=jnp.float32)
    y = object_encoder_forward(x, rescale=False)
    assert y.shape == x.shape and y.dtype == x.dtype
    assert bool(jnp.all(y == x))

    # 2) Materialized copy, lane-aligned total (2*4*16*16 = 2048 = 4*512).
    y = jax.block_until_ready(
        object_encoder_forward(x, rescale=False, materialize=True))
    assert y.shape == x.shape and y.dtype == x.dtype
    assert bool(jnp.all(y == x))

    # 3) Materialized copy, larger aligned total (rows=20, not multiple of 8).
    x3 = jax.random.normal(k2, (5, 4, 16, 32), dtype=jnp.float32)
    y3 = jax.block_until_ready(
        object_encoder_forward(x3, rescale=False, materialize=True))
    assert y3.shape == x3.shape and y3.dtype == x3.dtype
    assert bool(jnp.all(y3 == x3))

    # 4) Materialized copy, non-aligned total -> original-shape fallback path.
    x4 = jax.random.normal(k3, (1, 3, 17, 19), dtype=jnp.float32)
    y4 = jax.block_until_ready(
        object_encoder_forward(x4, rescale=False, materialize=True))
    assert y4.shape == x4.shape and y4.dtype == x4.dtype
    assert bool(jnp.all(y4 == x4))

    print("KERNEL_OK")
</pallas_src>

<mosaic_0001>
module attributes {stable_mosaic.version = 11 : i64} {
  func.func @_copy_kernel(%arg0: i32, %arg1: memref<4x512xf32, #tpu.memory_space<vmem>>, %arg2: memref<4x512xf32, #tpu.memory_space<vmem>>) attributes {dimension_semantics = [#tpu.dimension_semantics<parallel>], iteration_bounds = array<i64: 1>, scalar_prefetch = 0 : i64, scratch_operands = 0 : i64, tpu.core_type = #tpu.core_type<tc>, window_params = [{transform_indices = @transform_0, window_bounds = array<i64: 4, 512>}, {transform_indices = @transform_1, window_bounds = array<i64: 4, 512>}]} {
    %c0 = arith.constant 0 : index
    %c0_0 = arith.constant 0 : index
    %0 = vector.load %arg1[%c0, %c0_0] : memref<4x512xf32, #tpu.memory_space<vmem>>, vector<4x512xf32>
    %c0_1 = arith.constant 0 : index
    %c0_2 = arith.constant 0 : index
    %1 = vector.load %arg2[%c0_1, %c0_2] : memref<4x512xf32, #tpu.memory_space<vmem>>, vector<4x512xf32>
    tpu.vector_store %arg2[%c0_1, %c0_2], %0 {strides = array<i32>} : memref<4x512xf32, #tpu.memory_space<vmem>>, vector<4x512xf32>,
    return
  }
  func.func @transform_0(%arg0: i32) -> (i32, i32) {
    %c0_i32 = arith.constant 0 : i32
    %c0_i32_0 = arith.constant 0 : i32
    return %arg0, %c0_i32 : i32, i32
  }
  func.func @transform_1(%arg0: i32) -> (i32, i32) {
    %c0_i32 = arith.constant 0 : i32
    %c0_i32_0 = arith.constant 0 : i32
    return %arg0, %c0_i32 : i32, i32
  }
}

</mosaic_0001>

<bundles_post_ra>
// kernel: tpu_custom_call.1
= control target key start
LH: loop header
LB: loop body
LE: loop exit
PB: predicated region body
PF: predicated region fallthrough
CT: control target
= control target key end

     0   :  { %6 = vsyncpa [#allocation3], 0  ;;  %s104_s0 = inlined_call_operand.hbm [shape: f32[4,512], index: 0, kind: input, shape index: {}]   ;;  %s105_s1 = inlined_call_operand.hbm [shape: f32[4,512], index: 1, kind: output, shape index: {}]  }
   0x1   :  { %7 = vsyncpa [#allocation4], 0  ;;  %s86_s6 = smov [#allocation2]  }
   0x2   :  { %s14_s7 = sshll.u32 %s86_s6, 4  ;;  %s15_s7 = int_to_ptr.vmem [resolvable:$true] %s14_s7 }
   0x3   :  { %s50_s8 = scalar_lea.vmem %s15_s7, 256  ;;  %p55_p1 = scmp.lt.s32.totalorder %s15_s7, %s15_s7 }
   0x4   :  { %p51_p0 = scmp.ne.s32.totalorder %s15_s7, %s50_s8  ;;  %p56_p2 = scmp.lt.s32.totalorder %s50_s8, %s50_s8 }
   0x6   :  { %p57_p3 = por %p56_p2, %p55_p1 }
   0x8   :  { %p58_p4 = pnand %p57_p3, %p51_p0 }
   0xa   :  { %61 = shalt.err (!%p58_p4)
}
   0xb   :  { %17 = dma.hbm_to_vmem [thread:$0]  %s104_s0, 256, %s15_s7, [#allocation3]  }
   0xc   :  { %82 = dma.done.wait [#allocation3], 256  }
   0xd   :  { %83 = vsyncadd [#allocation3], 4294967040  ;;  %s87_s11 = smov [#allocation5]   ;;  %v21_v0 = vld [vmem:[#allocation2] sm:$0xff]  ;;  %v22_v1 = vld [vmem:[#allocation2 + $0x8] sm:$0xff] }
   0xe   :  { %s31_s12 = sshll.u32 %s87_s11, 4  ;;  %23 = vst [vmem:[#allocation5] sm:$0xff] %v21_v0  ;;  %24 = vst [vmem:[#allocation5 + $0x8] sm:$0xff] %v22_v1  ;;  %s32_s12 = int_to_ptr.vmem [resolvable:$true] %s31_s12 }
   0xf   :  { %s62_s13 = scalar_lea.vmem %s32_s12, 256  ;;  %p67_p6 = scmp.lt.s32.totalorder %s32_s12, %s32_s12 }
  0x10   :  { %p63_p5 = scmp.ne.s32.totalorder %s32_s12, %s62_s13  ;;  %p68_p7 = scmp.lt.s32.totalorder %s62_s13, %s62_s13 }
  0x12   :  { %p69_p8 = por %p68_p7, %p67_p6 }
  0x14   :  { %p70_p9 = pnand %p69_p8, %p63_p5 }
  0x16   :  { %73 = shalt.err (!%p70_p9)
}
  0x17   :  { %34 = dma.vmem_to_hbm [thread:$0]  %s32_s12, 256, %s105_s1, [#allocation4]  }
  0x18   :  { %84 = dma.done.wait [#allocation4], 256  }
  0x19   :  { %85 = vsyncadd [#allocation4], 4294967040 }
  0x1a   :  { %38 = vsyncpa [#allocation3], 1 }
  0x1b   :  { %39 = vsyncpa [#allocation4], 1 }

</bundles_post_ra>
